<compile_context>
chip_gen: v7x
topology: tpu7x:2x2x1
jax: 0.10.0
libtpu: 0.0.40
codegen_flags: <defaults>
</compile_context>

<pallas_src>
import jax
import jax.numpy as jnp
from jax.experimental import pallas as pl
from jax.experimental.pallas import tpu as pltpu

LN_EPS = 1e-5  # nn.LayerNorm default


def _round_up(v, m):
    return ((v + m - 1) // m) * m


def _vmem_budget_bytes():
    """Per-generation VMEM budget (~75% of physical capacity)."""
    try:
        cap = int(pltpu.get_tpu_info().vmem_capacity_bytes)
    except Exception:
        cap = 64 * 1024 * 1024  # conservative: valid on v5e/v6e/v7x
    return cap * 3 // 4


# -----------------------------------------------------------------------------
# Kernel 1: weight resident in VMEM (single-buffered), row-tiled grid.
# -----------------------------------------------------------------------------
def _prenorm_residual_kernel(x_ref, gamma_ref, w_ref, bias_ref, o_ref):
    x = x_ref[...].astype(jnp.float32)

    # LayerNorm statistics in f32 (matches the PyTorch reference numerics).
    mean = jnp.mean(x, axis=-1, keepdims=True)
    centered = x - mean
    var = jnp.mean(centered * centered, axis=-1, keepdims=True)
    y = centered * jax.lax.rsqrt(var + LN_EPS) * gamma_ref[...]

    # fn = Linear(D, D): MXU matmul in the weight's native dtype, f32 accumulate.
    proj = jnp.dot(y.astype(w_ref.dtype), w_ref[...],
                   preferred_element_type=jnp.float32)

    # Epilogue: bias (beta already folded in) + residual.  x is re-read here so
    # its f32 upcast does not stay live across the matmul.
    o_ref[...] = (proj + bias_ref[...]
                  + x_ref[...].astype(jnp.float32)).astype(o_ref.dtype)


# -----------------------------------------------------------------------------
# Kernel 2: large-D path -- the weight is column-tiled over a second grid axis.
# LayerNorm is computed once per row tile (at j == 0) into a VMEM scratch and
# reused for every column tile of the weight.
# -----------------------------------------------------------------------------
def _prenorm_residual_coltiled_kernel(x_full_ref, x_cols_ref, gamma_ref,
                                      w_ref, bias_ref, o_ref, y_ref):
    @pl.when(pl.program_id(1) == 0)
    def _():
        x = x_full_ref[...].astype(jnp.float32)
        mean = jnp.mean(x, axis=-1, keepdims=True)
        centered = x - mean
        var = jnp.mean(centered * centered, axis=-1, keepdims=True)
        y_ref[...] = (centered * jax.lax.rsqrt(var + LN_EPS)
                      * gamma_ref[...]).astype(y_ref.dtype)

    proj = jnp.dot(y_ref[...], w_ref[...], preferred_element_type=jnp.float32)
    o_ref[...] = (proj + bias_ref[...]
                  + x_cols_ref[...].astype(jnp.float32)).astype(o_ref.dtype)


def prenorm_residual(x, gamma, beta, w, bias, *, weight_dtype=None):
    """x: (B, N, D); gamma/beta: (D,); w: (D, D); bias: (D,).

    weight_dtype: optionally cast the weight (e.g. jnp.bfloat16) once in the
    wrapper -- recommended on v5e for large D.  None keeps the native dtype.
    """
    B, N, D = x.shape
    M = B * N
    x2 = x.reshape(M, D)

    if weight_dtype is not None:
        w = w.astype(weight_dtype)

    x_isz = x2.dtype.itemsize
    w_isz = w.dtype.itemsize

    # Hoisted f32 parameter casts; fold beta into the linear bias:
    #   (xhat*gamma + beta) @ W + b  ==  (xhat*gamma) @ W + (beta @ W + b)
    gamma2 = gamma.reshape(1, D).astype(jnp.float32)
    bias2 = (bias.astype(jnp.float32)
             + beta.astype(jnp.float32) @ w.astype(jnp.float32)).reshape(1, D)

    budget = _vmem_budget_bytes()

    # Large-D path: weight too large to sit resident in VMEM.
    col_tiled = (D % 128 == 0) and (D * D * w_isz > budget // 3)

    if not col_tiled:
        # --- Row tile: ~2 MiB of activations per grid step, multiple of 256. ---
        tm = _round_up(max(1, (2 * 1024 * 1024) // (D * x_isz)), 256)
        tm = max(256, min(tm, 4096))
        # Keep >= 8 row steps when M allows, so the "parallel" axis can shard
        # across both TensorCores on v7x (and the pipeline stays deep).
        if M >= 2 * 256:
            tm = min(tm, max(256, _round_up(pl.cdiv(M, 8), 256)))

        def vmem_needed(tm_):
            return (4 * tm_ * D * x_isz        # x + out blocks, double-buffered
                    + D * D * w_isz            # weight, single-buffered
                    + 6 * tm_ * D * 4          # in-kernel f32 temporaries
                    + 16 * D * 4)              # gamma / bias + slack

        while tm > 256 and vmem_needed(tm) > budget:
            tm = max(256, _round_up(tm // 2, 256))

        if M <= tm:
            tm = M  # single exact block; also handles tiny / ragged M cleanly

        grid_m = pl.cdiv(M, tm)  # partial last block is masked by Pallas

        out = pl.pallas_call(
            _prenorm_residual_kernel,
            out_shape=jax.ShapeDtypeStruct((M, D), x.dtype),
            grid_spec=pltpu.PrefetchScalarGridSpec(
                num_scalar_prefetch=0,
                grid=(grid_m,),
                in_specs=[
                    pl.BlockSpec((tm, D), lambda i: (i, 0)),      # x rows
                    pl.BlockSpec((1, D), lambda i: (0, 0)),       # gamma (f32)
                    pl.BlockSpec((D, D), lambda i: (0, 0),        # weight, resident
                                 pipeline_mode=pl.Buffered(1)),
                    pl.BlockSpec((1, D), lambda i: (0, 0)),       # bias' (f32)
                ],
                out_specs=pl.BlockSpec((tm, D), lambda i: (i, 0)),
            ),
            compiler_params=pltpu.CompilerParams(
                dimension_semantics=("parallel",),
                vmem_limit_bytes=budget),
        )(x2, gamma2, w, bias2)
    else:
        # --- Column-tile the weight: tn is a multiple of 128 dividing D. ---
        tn = 512
        while D % tn != 0:
            tn -= 128

        tm = _round_up(max(1, (2 * 1024 * 1024) // (D * x_isz)), 256)
        tm = max(256, min(tm, 2048))
        if M >= 2 * 256:
            tm = min(tm, max(256, _round_up(pl.cdiv(M, 8), 256)))

        def vmem_needed(tm_):
            return (2 * tm_ * D * x_isz        # x full-row view, double-buffered
                    + 4 * tm_ * tn * x_isz     # x column view + out, double-buffered
                    + 2 * D * tn * w_isz       # weight column blocks, double-buffered
                    + tm_ * D * w_isz          # LayerNorm scratch
                    + 4 * tm_ * D * 4          # f32 temporaries (LN at j == 0)
                    + 2 * tm_ * tn * 4         # f32 proj
                    + 16 * D * 4)

        while tm > 256 and vmem_needed(tm) > budget:
            tm = max(256, _round_up(tm // 2, 256))
        if M <= tm:
            tm = M

        grid = (pl.cdiv(M, tm), D // tn)

        out = pl.pallas_call(
            _prenorm_residual_coltiled_kernel,
            out_shape=jax.ShapeDtypeStruct((M, D), x.dtype),
            grid_spec=pltpu.PrefetchScalarGridSpec(
                num_scalar_prefetch=0,
                grid=grid,
                in_specs=[
                    pl.BlockSpec((tm, D), lambda i, j: (i, 0)),    # x, full rows (LN)
                    pl.BlockSpec((tm, tn), lambda i, j: (i, j)),   # x, residual cols
                    pl.BlockSpec((1, D), lambda i, j: (0, 0)),     # gamma (f32)
                    pl.BlockSpec((D, tn), lambda i, j: (0, j)),    # weight col block
                    pl.BlockSpec((1, tn), lambda i, j: (0, j)),    # bias' cols (f32)
                ],
                out_specs=pl.BlockSpec((tm, tn), lambda i, j: (i, j)),
                scratch_shapes=[pltpu.VMEM((tm, D), w.dtype)],     # LN result reuse
            ),
            compiler_params=pltpu.CompilerParams(
                dimension_semantics=("parallel", "arbitrary"),
                vmem_limit_bytes=budget),
        )(x2, x2, gamma2, w, bias2)

    return out.reshape(B, N, D)


def reference(x, gamma, beta, w, bias):
    xf = x.astype(jnp.float32)
    mean = jnp.mean(xf, axis=-1, keepdims=True)
    var = jnp.mean((xf - mean) ** 2, axis=-1, keepdims=True)
    xhat = (xf - mean) / jnp.sqrt(var + LN_EPS)
    y = xhat * gamma.astype(jnp.float32) + beta.astype(jnp.float32)
    proj = y @ w.astype(jnp.float32) + bias.astype(jnp.float32)
    return (proj + xf).astype(x.dtype)


if __name__ == "__main__":
    key = jax.random.PRNGKey(0)
    B, N, D = 2, 8, 128  # batch=2, seq=8, hidden=128 (lane-dense feature dim)

    kx, kw, kb, kg, kbe = jax.random.split(key, 5)
    x = jax.random.normal(kx, (B, N, D), dtype=jnp.float32)

    # LayerNorm affine params (perturbed from torch init to exercise gamma/beta).
    gamma = 1.0 + 0.1 * jax.random.normal(kg, (D,), dtype=jnp.float32)
    beta = 0.1 * jax.random.normal(kbe, (D,), dtype=jnp.float32)

    # fn = Linear(D, D): deterministic small random init.
    w = jax.random.normal(kw, (D, D), dtype=jnp.float32) * 0.02
    bias = jax.random.normal(kb, (D,), dtype=jnp.float32) * 0.02

    out = jax.block_until_ready(prenorm_residual(x, gamma, beta, w, bias))

    ref = reference(x, gamma, beta, w, bias)
    assert out.shape == ref.shape
    assert jnp.allclose(out, ref, atol=1e-4, rtol=1e-4), "mismatch vs reference"

    print("KERNEL_OK")
</pallas_src>

<mosaic_0001>
module attributes {stable_mosaic.version = 11 : i64} {
  func.func @_prenorm_residual_kernel(%arg0: i32, %arg1: memref<16x128xf32, #tpu.memory_space<vmem>>, %arg2: memref<1x128xf32, #tpu.memory_space<vmem>>, %arg3: memref<128x128xf32, #tpu.memory_space<vmem>>, %arg4: memref<1x128xf32, #tpu.memory_space<vmem>>, %arg5: memref<16x128xf32, #tpu.memory_space<vmem>>) attributes {dimension_semantics = [#tpu.dimension_semantics<parallel>], iteration_bounds = array<i64: 1>, scalar_prefetch = 0 : i64, scratch_operands = 0 : i64, tpu.core_type = #tpu.core_type<tc>, window_params = [{transform_indices = @transform_0, window_bounds = array<i64: 16, 128>}, {pipeline_mode = #tpu.pipeline_mode<synchronous>, transform_indices = @transform_1, window_bounds = array<i64: 1, 128>}, {pipeline_mode = #tpu.pipeline_mode<synchronous>, transform_indices = @transform_2, window_bounds = array<i64: 128, 128>}, {pipeline_mode = #tpu.pipeline_mode<synchronous>, transform_indices = @transform_3, window_bounds = array<i64: 1, 128>}, {transform_indices = @transform_4, window_bounds = array<i64: 16, 128>}]} {
    %c0 = arith.constant 0 : index
    %c0_0 = arith.constant 0 : index
    %0 = vector.load %arg1[%c0, %c0_0] : memref<16x128xf32, #tpu.memory_space<vmem>>, vector<16x128xf32>
    %cst = arith.constant dense<0.000000e+00> : vector<16xf32>
    %1 = vector.multi_reduction <add>, %0, %cst [1] : vector<16x128xf32> to vector<16xf32>
    %2 = vector.shape_cast %1 : vector<16xf32> to vector<16x1xf32>
    %cst_1 = arith.constant 1.280000e+02 : f32
    %3 = vector.broadcast %cst_1 : f32 to vector<16x1xf32>
    %4 = arith.divf %2, %3 : vector<16x1xf32>
    %5 = vector.broadcast %4 : vector<16x1xf32> to vector<16x128xf32>
    %6 = arith.subf %0, %5 : vector<16x128xf32>
    %7 = arith.mulf %6, %6 : vector<16x128xf32>
    %cst_2 = arith.constant dense<0.000000e+00> : vector<16xf32>
    %8 = vector.multi_reduction <add>, %7, %cst_2 [1] : vector<16x128xf32> to vector<16xf32>
    %9 = vector.shape_cast %8 : vector<16xf32> to vector<16x1xf32>
    %cst_3 = arith.constant 1.280000e+02 : f32
    %10 = vector.broadcast %cst_3 : f32 to vector<16x1xf32>
    %11 = arith.divf %9, %10 : vector<16x1xf32>
    %cst_4 = arith.constant 9.99999974E-6 : f32
    %12 = vector.broadcast %cst_4 : f32 to vector<16x1xf32>
    %13 = arith.addf %11, %12 : vector<16x1xf32>
    %14 = math.rsqrt %13 : vector<16x1xf32>
    %15 = vector.broadcast %14 : vector<16x1xf32> to vector<16x128xf32>
    %16 = arith.mulf %6, %15 : vector<16x128xf32>
    %c0_5 = arith.constant 0 : index
    %c0_6 = arith.constant 0 : index
    %17 = vector.load %arg2[%c0_5, %c0_6] : memref<1x128xf32, #tpu.memory_space<vmem>>, vector<1x128xf32>
    %18 = vector.broadcast %17 : vector<1x128xf32> to vector<16x128xf32>
    %19 = arith.mulf %16, %18 : vector<16x128xf32>
    %c0_7 = arith.constant 0 : index
    %c0_8 = arith.constant 0 : index
    %20 = vector.load %arg3[%c0_7, %c0_8] : memref<128x128xf32, #tpu.memory_space<vmem>>, vector<128x128xf32>
    %cst_9 = arith.constant dense<0.000000e+00> : vector<16x128xf32>
    %21 = tpu.matmul %19, %20, %cst_9 {dimension_numbers = #tpu.dot_dimension_numbers<[1], [0], [0], [1], [0, 0, 1, 1], [], []>} : vector<16x128xf32>, vector<128x128xf32>, vector<16x128xf32> -> vector<16x128xf32>
    %c0_10 = arith.constant 0 : index
    %c0_11 = arith.constant 0 : index
    %22 = vector.load %arg4[%c0_10, %c0_11] : memref<1x128xf32, #tpu.memory_space<vmem>>, vector<1x128xf32>
    %23 = vector.broadcast %22 : vector<1x128xf32> to vector<16x128xf32>
    %24 = arith.addf %21, %23 : vector<16x128xf32>
    %c0_12 = arith.constant 0 : index
    %c0_13 = arith.constant 0 : index
    %25 = vector.load %arg1[%c0_12, %c0_13] : memref<16x128xf32, #tpu.memory_space<vmem>>, vector<16x128xf32>
    %26 = arith.addf %24, %25 : vector<16x128xf32>
    %c0_14 = arith.constant 0 : index
    %c0_15 = arith.constant 0 : index
    %27 = vector.load %arg5[%c0_14, %c0_15] : memref<16x128xf32, #tpu.memory_space<vmem>>, vector<16x128xf32>
    tpu.vector_store %arg5[%c0_14, %c0_15], %26 {strides = array<i32>} : memref<16x128xf32, #tpu.memory_space<vmem>>, vector<16x128xf32>,
    return
  }
  func.func @transform_0(%arg0: i32) -> (i32, i32) {
    %c0_i32 = arith.constant 0 : i32
    %c0_i32_0 = arith.constant 0 : i32
    return %arg0, %c0_i32 : i32, i32
  }
  func.func @transform_1(%arg0: i32) -> (i32, i32) {
    %c0_i32 = arith.constant 0 : i32
    %c0_i32_0 = arith.constant 0 : i32
    %c0_i32_1 = arith.constant 0 : i32
    return %c0_i32, %c0_i32_0 : i32, i32
  }
  func.func @transform_2(%arg0: i32) -> (i32, i32) {
    %c0_i32 = arith.constant 0 : i32
    %c0_i32_0 = arith.constant 0 : i32
    %c0_i32_1 = arith.constant 0 : i32
    return %c0_i32, %c0_i32_0 : i32, i32
  }
  func.func @transform_3(%arg0: i32) -> (i32, i32) {
    %c0_i32 = arith.constant 0 : i32
    %c0_i32_0 = arith.constant 0 : i32
    %c0_i32_1 = arith.constant 0 : i32
    return %c0_i32, %c0_i32_0 : i32, i32
  }
  func.func @transform_4(%arg0: i32) -> (i32, i32) {
    %c0_i32 = arith.constant 0 : i32
    %c0_i32_0 = arith.constant 0 : i32
    return %arg0, %c0_i32 : i32, i32
  }
}

</mosaic_0001>

<bundles_post_ra>
// kernel: tpu_custom_call.1
= control target key start
LH: loop header
LB: loop body
LE: loop exit
PB: predicated region body
PF: predicated region fallthrough
CT: control target
= control target key end

     0   :  { %9 = vsyncpa [#allocation3], 0  ;;  %s459_s0 = inlined_call_operand.hbm [shape: f32[16,128], index: 0, kind: input, shape index: {}]   ;;  %s460_s1 = inlined_call_operand.vmem [shape: f32[1,128], index: 1, kind: input, shape index: {}]   ;;  %s461_s2 = inlined_call_operand.hbm [shape: f32[128,128], index: 2, kind: input, shape index: {}]   ;;  %s462_s3 = inlined_call_operand.vmem [shape: f32[1,128], index: 3, kind: input, shape index: {}]   ;;  %s463_s4 = inlined_call_operand.hbm [shape: f32[16,128], index: 4, kind: output, shape index: {}]  }
   0x1   :  { %10 = vsyncpa [#allocation6], 0 }
   0x2   :  { %11 = vsyncpa [#allocation4], 0  ;;  %s368_s15 = smov [#allocation2]   ;;  %s296_s19 = scalar_lea.hbm %s459_s0, 256 }
   0x3   :  { %s17_s16 = sshll.u32 %s368_s15, 4  ;;  %p297_p0 = scmp.ne.s32.totalorder %s459_s0, %s296_s19  ;;  %s18_s16 = int_to_ptr.vmem [resolvable:$true] %s17_s16 }
   0x4   :  { %p300_p1 = scmp.lt.u32.totalorder %s296_s19, %s459_s0 }
   0x6   :  { %p302_p2 = pnand %p300_p1, %p297_p0 }
   0x8   :  { %305 = shalt.err (!%p302_p2)
}
   0x9   :  { %s306_s24 = scalar_lea.vmem %s18_s16, 256  ;;  %p311_p4 = scmp.lt.s32.totalorder %s18_s16, %s18_s16 }
   0xa   :  { %p307_p3 = scmp.ne.s32.totalorder %s18_s16, %s306_s24  ;;  %p312_p5 = scmp.lt.s32.totalorder %s306_s24, %s306_s24 }
   0xc   :  { %p313_p6 = por %p312_p5, %p311_p4 }
   0xe   :  { %p314_p7 = pnand %p313_p6, %p307_p3 }
  0x10   :  { %317 = shalt.err (!%p314_p7)
}
  0x11   :  { %s369_s25 = smov 128   ;;  %s370_s26 = smov 8  }
  0x12   :  { %23 = dma.hbm_to_vmem [thread:$0]  %s459_s0, 256, %s18_s16, [#allocation3], %s369_s25, %s369_s25, %s370_s26  }
  0x13   :  { %s371_s29 = smov [#allocation5]   ;;  %s318_s7 = scalar_lea.hbm %s461_s2, 2048 }
  0x14   :  { %s31_s30 = sshll.u32 %s371_s29, 4  ;;  %p319_p8 = scmp.ne.s32.totalorder %s461_s2, %s318_s7  ;;  %s32_s30 = int_to_ptr.vmem [resolvable:$true] %s31_s30 }
  0x15   :  { %p322_p9 = scmp.lt.u32.totalorder %s318_s7, %s461_s2 }
  0x17   :  { %p324_p10 = pnand %p322_p9, %p319_p8 }
  0x19   :  { %327 = shalt.err (!%p324_p10)
}
  0x1a   :  { %s328_s12 = scalar_lea.vmem %s32_s30, 2048  ;;  %p333_p12 = scmp.lt.s32.totalorder %s32_s30, %s32_s30 }
  0x1b   :  { %p329_p11 = scmp.ne.s32.totalorder %s32_s30, %s328_s12  ;;  %p334_p13 = scmp.lt.s32.totalorder %s328_s12, %s328_s12 }
  0x1d   :  { %p335_p0 = por %p334_p13, %p333_p12 }
  0x1f   :  { %p336_p1 = pnand %p335_p0, %p329_p11 }
  0x21   :  { %339 = shalt.err (!%p336_p1)
}
  0x22   :  { %37 = dma.hbm_to_vmem [thread:$0]  %s461_s2, 2048, %s32_s30, [#allocation6], %s369_s25, %s369_s25, %s370_s26  }
  0x23   :  { %362 = dma.done.wait [#allocation3], 256  }
  0x24   :  { %363 = vsyncadd [#allocation3], 4294967040 }
  0x25   :  { %364 = dma.done.wait [#allocation6], 2048  }
  0x26   :  { %365 = vsyncadd [#allocation6], 4294965248  ;;  %v428_v0 = vld [vmem:[#allocation2] sm:$0xff]  ;;  %v431_v1 = vld [vmem:[#allocation2 + $0x8] sm:$0xff]  ;;  %s372_s17 = smov [#allocation7]  }
  0x27   :  { %48 = vadd.xlane.f32.xlu0 %v428_v0  ;;  %v80_v2 = vld [vmem:[#allocation5] sm:$0xff]  ;;  %v81_v3 = vld [vmem:[#allocation5 + $0x8] sm:$0xff]  ;;  %v82_v4 = vld [vmem:[#allocation5 + $0x10] sm:$0xff]  ;;  %s187_s18 = sshll.u32 %s372_s17, 4  ;;  %s188_s18 = int_to_ptr.vmem [resolvable:$true] %s187_s18 }
  0x28   :  { %v255_v5 = vpack.c.bf16 %v81_v3, %v80_v2  ;;  %v83_v6 = vld [vmem:[#allocation5 + $0x18] sm:$0xff]  ;;  %v84_v8 = vld [vmem:[#allocation5 + $0x20] sm:$0xff]  ;;  %v85_v9 = vld [vmem:[#allocation5 + $0x28] sm:$0xff]  ;;  %p345_p3 = scmp.lt.s32.totalorder %s188_s18, %s188_s18 }
  0x29   :  { %v259_v7 = vpack.c.bf16 %v83_v6, %v82_v4  ;;  %v263_v10 = vpack.c.bf16 %v85_v9, %v84_v8  ;;  %v86_v19 = vld [vmem:[#allocation5 + $0x30] sm:$0xff]  ;;  %v87_v20 = vld [vmem:[#allocation5 + $0x38] sm:$0xff]  ;;  %v88_v22 = vld [vmem:[#allocation5 + $0x40] sm:$0xff] }
  0x2a   :  { %256 = vmatprep.subr.bf16.mxu0 %v255_v5  ;;  %v267_v21 = vpack.c.bf16 %v87_v20, %v86_v19  ;;  %v89_v23 = vld [vmem:[#allocation5 + $0x48] sm:$0xff]  ;;  %v90_v25 = vld [vmem:[#allocation5 + $0x50] sm:$0xff]  ;;  %v91_v26 = vld [vmem:[#allocation5 + $0x58] sm:$0xff] }
  0x2b   :  { %50 = vadd.xlane.f32.xlu0 %v431_v1  ;;  %258 = vmatpush3.bf16.msra.mxu0 %v255_v5  ;;  %v271_v24 = vpack.c.bf16 %v89_v23, %v88_v22  ;;  %v92_v27 = vld [vmem:[#allocation5 + $0x60] sm:$0xff]  ;;  %v275_v28 = vpack.c.bf16 %v91_v26, %v90_v25  ;;  %v93_v29 = vld [vmem:[#allocation5 + $0x68] sm:$0xff]  ;;  %v94_v31 = vld [vmem:[#allocation5 + $0x70] sm:$0xff] }
  0x2c   :  { %260 = vmatprep.subr.bf16.mxu0 %v259_v7  ;;  %v279_v30 = vpack.c.bf16 %v93_v29, %v92_v27  ;;  %v95_v32 = vld [vmem:[#allocation5 + $0x78] sm:$0xff]  ;;  %v200_v41 = vld [vmem:[%s460_s1] ss:$0 sm:$0xff]  ;;  %s340_s1 = scalar_lea.vmem %s188_s18, 256 }
  0x2d   :  { %v283_v33 = vpack.c.bf16 %v95_v32, %v94_v31  ;;  %v201_v47 = vld [vmem:[%s462_s3] ss:$0 sm:$0xff]  ;;  %p341_p2 = scmp.ne.s32.totalorder %s188_s18, %s340_s1  ;;  %p346_p4 = scmp.lt.s32.totalorder %s340_s1, %s340_s1 }
  0x2f   :  { %262 = vmatpush3.bf16.msra.mxu0 %v259_v7  ;;  %p347_p5 = por %p346_p4, %p345_p3 }
  0x30   :  { %264 = vmatprep.subr.bf16.mxu0 %v263_v10 }
  0x31   :  { %p348_p6 = pnand %p347_p5, %p341_p2 }
  0x33   :  { %266 = vmatpush3.bf16.msra.mxu0 %v263_v10 }
  0x34   :  { %268 = vmatprep.subr.bf16.mxu0 %v267_v21 }
  0x37   :  { %270 = vmatpush3.bf16.msra.mxu0 %v267_v21 }
  0x38   :  { %272 = vmatprep.subr.bf16.mxu0 %v271_v24 }
  0x3b   :  { %274 = vmatpush3.bf16.msra.mxu0 %v271_v24 }
  0x3c   :  { %276 = vmatprep.subr.bf16.mxu0 %v275_v28 }
  0x3f   :  { %278 = vmatpush3.bf16.msra.mxu0 %v275_v28 }
  0x40   :  { %280 = vmatprep.subr.bf16.mxu0 %v279_v30 }
  0x43   :  { %282 = vmatpush3.bf16.msra.mxu0 %v279_v30 }
  0x44   :  { %284 = vmatprep.subr.bf16.mxu0 %v283_v33 }
  0x47   :  { %286 = vmatpush3.bf16.msra.mxu0 %v283_v33 }
  0xb4   :  { %v49_v11 = vpop.xlane.xlu0 %48 }
  0xb5   :  { %v53_v12 = vmul.f32 0.0078125, %v49_v11 }
  0xb7   :  { %v55_v13 = vsub.f32 %v428_v0, %v53_v12 }
  0xb8   :  { %v51_v14 = vpop.xlane.xlu0 %50 }
  0xb9   :  { %v54_v15 = vmul.f32 0.0078125, %v51_v14  ;;  %v57_v16 = vmul.f32 %v55_v13, %v55_v13 }
  0xbb   :  { %v56_v17 = vsub.f32 %v431_v1, %v54_v15  ;;  %59 = vadd.xlane.f32.xlu1 %v57_v16 }
  0xbd   :  { %v58_v18 = vmul.f32 %v56_v17, %v56_v17 }
  0xbf   :  { %61 = vadd.xlane.f32.xlu1 %v58_v18 }
 0x148   :  { %v60_v34 = vpop.xlane.xlu1 %59 }
 0x149   :  { %v63_v35 = vmul.f32 0.0078125, %v60_v34 }
 0x14b   :  { %v65_v36 = vadd.f32 1e-05, %v63_v35 }
 0x14c   :  { %v62_v37 = vpop.xlane.xlu1 %61 }
 0x14d   :  { %292 = vrsqrt.f32 %v65_v36  ;;  %v64_v38 = vmul.f32 0.0078125, %v62_v37 }
 0x14f   :  { %v66_v39 = vadd.f32 1e-05, %v64_v38 }
 0x151   :  { %294 = vrsqrt.f32 %v66_v39 }
 0x157   :  { %v293_v40 = vpop.eup %292 }
 0x158   :  { %v69_v42 = vmul.f32 %v293_v40, %v55_v13 }
 0x15a   :  { %v78_v43 = vmul.f32 %v200_v41, %v69_v42 }
 0x15b   :  { %v295_v44 = vpop.eup %294 }
 0x15c   :  { %v70_v45 = vmul.f32 %v295_v44, %v56_v17  ;;  %252 = vmatprep.mubr.f32.mxu0 %v78_v43 }
 0x15e   :  { %v79_v46 = vmul.f32 %v200_v41, %v70_v45 }
 0x160   :  { %253 = vmatmul.mubr.f32.vlgmr.msra.gmra.mrb[0].mxu0 %v79_v46 }
 0x233   :  { %v254_v48 = vpop.f32.mrb[0].mxu0 }
 0x234   :  { %v175_v49 = vadd.f32 %v254_v48, %v201_v47  ;;  %v169_v50 = vpop.f32.mrb[1].mxu0 }
 0x235   :  { %v170_v51 = vadd.f32 %v201_v47, %v169_v50 }
 0x236   :  { %v179_v52 = vadd.f32 %v175_v49, %v431_v1 }
 0x237   :  { %v178_v53 = vadd.f32 %v170_v51, %v428_v0 }
 0x238   :  { %181 = vst [vmem:[#allocation7 + $0x8] sm:$0xff] %v179_v52 }
 0x239   :  { %180 = vst [vmem:[#allocation7] sm:$0xff] %v178_v53 }
 0x23a   :  { %351 = shalt.err (!%p348_p6)
}
 0x23b   :  { %s352_s20 = scalar_lea.hbm %s463_s4, 256 }
 0x23c   :  { %p353_p7 = scmp.ne.s32.totalorder %s463_s4, %s352_s20  ;;  %p356_p8 = scmp.lt.u32.totalorder %s352_s20, %s463_s4 }
 0x23e   :  { %p358_p9 = pnand %p356_p8, %p353_p7 }
 0x240   :  { %361 = shalt.err (!%p358_p9)
}
 0x241   :  { %193 = dma.vmem_to_hbm [thread:$0]  %s188_s18, 256, %s463_s4, [#allocation4], %s369_s25, %s369_s25, %s370_s26  }
 0x242   :  { %366 = dma.done.wait [#allocation4], 256  }
 0x243   :  { %367 = vsyncadd [#allocation4], 4294967040 }
 0x244   :  { %197 = vsyncpa [#allocation3], 1 }
 0x245   :  { %198 = vsyncpa [#allocation6], 1 }
 0x246   :  { %199 = vsyncpa [#allocation4], 1 }

</bundles_post_ra>
